<compile_context>
chip_gen: v6e
topology: v6e:2x2x1
jax: 0.10.0
libtpu: 0.0.40
codegen_flags: <defaults>
</compile_context>

<pallas_src>
import functools

import jax
import jax.numpy as jnp
from jax.experimental import pallas as pl
from jax.experimental.pallas import tpu as pltpu


# ----------------------------- Pallas kernel ------------------------------- #

def _copy_kernel(x_ref, o_ref):
    # Straight move of one (tile_rows, lanes) block.
    o_ref[...] = x_ref[...]


# ------------------------------- wrapper ----------------------------------- #

def _lane_dense_view(total, out_shape):
    """Pick a (rows, cols) 2-D view; prefer a lane width that is a multiple of
    128 so every store is an unmasked, lane-dense vst."""
    for c in (2048, 1024, 512, 256, 128):
        if total % c == 0:
            return total // c, c
    c = out_shape[-1]                 # fallback: trailing dim of squeezed shape
    return total // c, c


def _pick_row_tile(rows, cols, itemsize):
    """Largest row tile that divides `rows`, is a multiple of 8 (or == rows),
    and keeps one block <= ~4 MiB."""
    max_rows = max(1, (4 << 20) // max(1, cols * itemsize))
    if rows <= max_rows:
        return rows
    t = max(8, (max_rows // 8) * 8)
    while t > 8 and rows % t:
        t -= 8
    return t if rows % t == 0 else rows


def squeeze_forward(x, dim):
    """Pallas implementation of torch `x.squeeze(dim)` (same semantics:
    removes the dim only if it has size 1, otherwise returns x unchanged)."""
    nd = x.ndim
    d = dim + nd if dim < 0 else dim
    if x.shape[d] == 1:
        out_shape = x.shape[:d] + x.shape[d + 1:]
    else:
        out_shape = x.shape           # PyTorch: no-op when the dim is not 1

    total = 1
    for s in out_shape:
        total *= s
    if total == 0 or len(out_shape) == 0:
        # Degenerate sizes: squeeze is metadata-only, nothing worth a kernel.
        return jnp.reshape(x, out_shape)

    rows, cols = _lane_dense_view(total, out_shape)
    tile_rows = _pick_row_tile(rows, cols, x.dtype.itemsize)

    x2 = jnp.reshape(x, (rows, cols))      # free: contiguous row-major view
    out2 = pl.pallas_call(
        _copy_kernel,
        grid=(rows // tile_rows,),
        in_specs=[pl.BlockSpec((tile_rows, cols), lambda i: (i, 0))],
        out_specs=pl.BlockSpec((tile_rows, cols), lambda i: (i, 0)),
        out_shape=jax.ShapeDtypeStruct((rows, cols), x.dtype),
        compiler_params=pltpu.CompilerParams(
            dimension_semantics=("parallel",)),
    )(x2)
    return jnp.reshape(out2, out_shape)


# ---------------------------------- main ------------------------------------ #

if __name__ == "__main__":
    key = jax.random.PRNGKey(0)
    dim = 2
    # batch=2, channels=4, a size-1 dim to squeeze, spatial 16x16.
    x = jax.random.normal(key, (2, 4, 1, 16, 16), jnp.float32)

    fwd = jax.jit(functools.partial(squeeze_forward, dim=dim))
    out = jax.block_until_ready(fwd(x))

    ref = jnp.squeeze(x, axis=dim)
    assert out.shape == ref.shape == (2, 4, 16, 16), out.shape
    assert bool(jnp.array_equal(out, ref))

    # Also exercise the PyTorch "no-op" branch (dim whose size is not 1).
    out2 = jax.block_until_ready(
        jax.jit(functools.partial(squeeze_forward, dim=1))(x))
    assert out2.shape == x.shape
    assert bool(jnp.array_equal(out2, x))

    print("KERNEL_OK")
</pallas_src>

<mosaic_0001>
module attributes {stable_mosaic.version = 11 : i64} {
  func.func @_copy_kernel(%arg0: i32, %arg1: memref<1x2048xf32, #tpu.memory_space<vmem>>, %arg2: memref<1x2048xf32, #tpu.memory_space<vmem>>) attributes {dimension_semantics = [#tpu.dimension_semantics<parallel>], iteration_bounds = array<i64: 1>, scalar_prefetch = 0 : i64, scratch_operands = 0 : i64, tpu.core_type = #tpu.core_type<tc>, window_params = [{transform_indices = @transform_0, window_bounds = array<i64: 1, 2048>}, {transform_indices = @transform_1, window_bounds = array<i64: 1, 2048>}]} {
    %c0 = arith.constant 0 : index
    %c0_0 = arith.constant 0 : index
    %0 = vector.load %arg1[%c0, %c0_0] : memref<1x2048xf32, #tpu.memory_space<vmem>>, vector<1x2048xf32>
    %c0_1 = arith.constant 0 : index
    %c0_2 = arith.constant 0 : index
    %1 = vector.load %arg2[%c0_1, %c0_2] : memref<1x2048xf32, #tpu.memory_space<vmem>>, vector<1x2048xf32>
    tpu.vector_store %arg2[%c0_1, %c0_2], %0 {strides = array<i32>} : memref<1x2048xf32, #tpu.memory_space<vmem>>, vector<1x2048xf32>,
    return
  }
  func.func @transform_0(%arg0: i32) -> (i32, i32) {
    %c0_i32 = arith.constant 0 : i32
    %c0_i32_0 = arith.constant 0 : i32
    return %arg0, %c0_i32 : i32, i32
  }
  func.func @transform_1(%arg0: i32) -> (i32, i32) {
    %c0_i32 = arith.constant 0 : i32
    %c0_i32_0 = arith.constant 0 : i32
    return %arg0, %c0_i32 : i32, i32
  }
}

</mosaic_0001>

<bundles_post_ra>
// kernel: squeeze_forward.1
= control target key start
LH: loop header
LB: loop body
LE: loop exit
PB: predicated region body
PF: predicated region fallthrough
CT: control target
= control target key end

     0   :  { %s38_s0 = inlined_call_operand.vmem [shape: f32[1,2048], index: 0, kind: input, shape index: {}]   ;;  %s39_s1 = inlined_call_operand.vmem [shape: f32[1,2048], index: 1, kind: output, shape index: {}]  }
   0x1   :  { %v8_v0 = vld [vmem:[%s38_s0] sm:$0xff]  ;;  %v9_v1 = vld [vmem:[%s38_s0 + $0x8] sm:$0xff] }
   0x2   :  { %10 = vst [vmem:[%s39_s1] sm:$0xff] %v8_v0  ;;  %11 = vst [vmem:[%s39_s1 + $0x8] sm:$0xff] %v9_v1 }

</bundles_post_ra>
